<compile_context>
chip_gen: v7x
topology: tpu7x:2x2x1
jax: 0.10.0
libtpu: 0.0.40
codegen_flags: <defaults>
</compile_context>

<pallas_src>
import functools

import jax
import jax.numpy as jnp
from jax.experimental import pallas as pl
from jax.experimental.pallas import tpu as pltpu

EPS = 1e-5

_LANE = 128
_SUBLANE = 8
_MAX_TILE_ROWS = 1024
_STREAM_HW_BLOCK = 16 * 1024                 # lane-tile width for the streaming IN path
_VMEM_BUFFER_BUDGET = 16 * 1024 * 1024       # bytes for (in + out) x double-buffer, f32
_VMEM_LIMIT = 32 * 1024 * 1024               # explicit scoped-VMEM limit (fits all chips)


# ------------------------------ Tiling helpers -------------------------------

def _round_up(v, m):
    return ((v + m - 1) // m) * m


def _row_block(hw_block, nc):
    """Largest row tile (multiple of 8, or full NC when NC < 8) fitting the VMEM budget."""
    if nc < _SUBLANE:
        return nc
    per_row_bytes = 4 * hw_block * 4          # (in + out) x double-buffer x f32
    t = _VMEM_BUFFER_BUDGET // per_row_bytes
    t = min(t, _MAX_TILE_ROWS, nc)
    return max(_SUBLANE, (t // _SUBLANE) * _SUBLANE)


def _lane_block(hw):
    """Lane-dense full-row block: multiple of 128, or the exact (full) dim when HW < 128."""
    return _round_up(hw, _LANE) if hw >= _LANE else hw


# ----------------------------- Pallas kernels -------------------------------

def _instance_norm_kernel(x_ref, o_ref, *, hw, inv_hw, masked):
    """Per-row normalization over the last axis: (x - mean) * rsqrt(var + eps).

    Two-pass (centered) variance for numerical parity with PyTorch. When the lane
    block extends past `hw` (boundary block), padded columns are masked out of
    both reductions; their outputs are dropped by the masked partial store.
    """
    x = x_ref[...].astype(jnp.float32)
    if masked:
        col = jax.lax.broadcasted_iota(jnp.int32, x.shape, 1)
        x = jnp.where(col < hw, x, 0.0)
    mean = jnp.sum(x, axis=-1, keepdims=True) * inv_hw
    xc = x - mean
    sq = jnp.where(col < hw, xc * xc, 0.0) if masked else xc * xc
    var = jnp.sum(sq, axis=-1, keepdims=True) * inv_hw       # biased variance (PyTorch IN)
    inv = jax.lax.rsqrt(var + EPS)                            # EUP rsqrt
    o_ref[...] = (xc * inv).astype(o_ref.dtype)


def _in_stats_kernel(x_ref, mean_ref, inv_ref, sum_sc, sq_sc,
                     *, hw, inv_hw, hw_block, masked):
    """Streaming pass 1: accumulate per-row sum / sum-of-squares over HW tiles."""
    k = pl.program_id(1)

    @pl.when(k == 0)
    def _():
        sum_sc[...] = jnp.zeros_like(sum_sc)
        sq_sc[...] = jnp.zeros_like(sq_sc)

    x = x_ref[...].astype(jnp.float32)
    if masked:
        col = k * hw_block + jax.lax.broadcasted_iota(jnp.int32, x.shape, 1)
        x = jnp.where(col < hw, x, 0.0)
    sum_sc[...] += jnp.sum(x, axis=-1, keepdims=True)
    sq_sc[...] += jnp.sum(x * x, axis=-1, keepdims=True)

    @pl.when(k == pl.num_programs(1) - 1)
    def _():
        mean = sum_sc[...] * inv_hw
        var = jnp.maximum(sq_sc[...] * inv_hw - mean * mean, 0.0)
        mean_ref[...] = mean
        inv_ref[...] = jax.lax.rsqrt(var + EPS)


def _in_apply_kernel(x_ref, mean_ref, inv_ref, o_ref):
    """Streaming pass 2: elementwise (x - mean) * inv."""
    xc = x_ref[...].astype(jnp.float32) - mean_ref[...]
    o_ref[...] = (xc * inv_ref[...]).astype(o_ref.dtype)


def _affine_kernel(x_ref, scale_ref, shift_ref, o_ref):
    """Eval-mode batch norm: per-row scale/shift (precomputed from running stats)."""
    o_ref[...] = (x_ref[...].astype(jnp.float32) * scale_ref[...]
                  + shift_ref[...]).astype(o_ref.dtype)


# ------------------------------ Path wrappers --------------------------------

def _instance_norm_single(x2, hw_block):
    """Full row in one block (one-pass over HBM, two-pass variance in VMEM)."""
    NC, HW = x2.shape
    tile_r = _row_block(hw_block, NC)
    grid = (pl.cdiv(NC, tile_r),)
    kernel = functools.partial(
        _instance_norm_kernel, hw=HW, inv_hw=1.0 / HW, masked=(hw_block != HW))
    return pl.pallas_call(
        kernel,
        out_shape=jax.ShapeDtypeStruct((NC, HW), x2.dtype),
        grid=grid,
        in_specs=[pl.BlockSpec((tile_r, hw_block), lambda i: (i, 0))],
        out_specs=pl.BlockSpec((tile_r, hw_block), lambda i: (i, 0)),
        compiler_params=pltpu.CompilerParams(
            dimension_semantics=("parallel",),
            vmem_limit_bytes=_VMEM_LIMIT),
    )(x2)


def _instance_norm_streaming(x2):
    """HW too large for a full-row tile: stats kernel + apply kernel, tiled over HW."""
    NC, HW = x2.shape
    hw_block = _STREAM_HW_BLOCK
    tile_r = _row_block(hw_block, NC)
    n_rows = pl.cdiv(NC, tile_r)
    n_cols = pl.cdiv(HW, hw_block)
    masked = (HW % hw_block) != 0

    stats_kernel = functools.partial(
        _in_stats_kernel, hw=HW, inv_hw=1.0 / HW, hw_block=hw_block, masked=masked)
    mean, inv = pl.pallas_call(
        stats_kernel,
        out_shape=(jax.ShapeDtypeStruct((NC, 1), jnp.float32),
                   jax.ShapeDtypeStruct((NC, 1), jnp.float32)),
        grid=(n_rows, n_cols),
        in_specs=[pl.BlockSpec((tile_r, hw_block), lambda i, k: (i, k))],
        out_specs=(pl.BlockSpec((tile_r, 1), lambda i, k: (i, 0)),
                   pl.BlockSpec((tile_r, 1), lambda i, k: (i, 0))),
        scratch_shapes=[pltpu.VMEM((tile_r, 1), jnp.float32),
                        pltpu.VMEM((tile_r, 1), jnp.float32)],
        compiler_params=pltpu.CompilerParams(
            dimension_semantics=("parallel", "arbitrary"),
            vmem_limit_bytes=_VMEM_LIMIT),
    )(x2)

    return pl.pallas_call(
        _in_apply_kernel,
        out_shape=jax.ShapeDtypeStruct((NC, HW), x2.dtype),
        grid=(n_rows, n_cols),
        in_specs=[pl.BlockSpec((tile_r, hw_block), lambda i, k: (i, k)),
                  pl.BlockSpec((tile_r, 1), lambda i, k: (i, 0)),
                  pl.BlockSpec((tile_r, 1), lambda i, k: (i, 0))],
        out_specs=pl.BlockSpec((tile_r, hw_block), lambda i, k: (i, k)),
        compiler_params=pltpu.CompilerParams(
            dimension_semantics=("parallel", "parallel"),
            vmem_limit_bytes=_VMEM_LIMIT),
    )(x2, mean, inv)


def _batch_norm_eval(x2, params, N, C):
    NC, HW = x2.shape
    gamma, beta, r_mean, r_var = params
    scale_c = gamma / jnp.sqrt(r_var + EPS)                  # per-channel, tiny glue
    shift_c = beta - r_mean * scale_c
    scale = jnp.tile(scale_c, (N,)).reshape(NC, 1)           # row = n*C + c
    shift = jnp.tile(shift_c, (N,)).reshape(NC, 1)

    hw_block = min(_lane_block(HW), _STREAM_HW_BLOCK)
    tile_r = _row_block(hw_block, NC)
    grid = (pl.cdiv(NC, tile_r), pl.cdiv(HW, hw_block))
    return pl.pallas_call(
        _affine_kernel,
        out_shape=jax.ShapeDtypeStruct((NC, HW), x2.dtype),
        grid=grid,
        in_specs=[pl.BlockSpec((tile_r, hw_block), lambda i, k: (i, k)),
                  pl.BlockSpec((tile_r, 1), lambda i, k: (i, 0)),
                  pl.BlockSpec((tile_r, 1), lambda i, k: (i, 0))],
        out_specs=pl.BlockSpec((tile_r, hw_block), lambda i, k: (i, k)),
        compiler_params=pltpu.CompilerParams(
            dimension_semantics=("parallel", "parallel"),
            vmem_limit_bytes=_VMEM_LIMIT),
    )(x2, scale, shift)


# -------------------------------- Public API ----------------------------------

def init_params(in_features, key):
    """Deterministic BatchNorm2d parameters (gamma, beta, running_mean, running_var)."""
    k1, k2, k3, k4 = jax.random.split(key, 4)
    gamma = 1.0 + 0.1 * jax.random.normal(k1, (in_features,), jnp.float32)
    beta = 0.1 * jax.random.normal(k2, (in_features,), jnp.float32)
    r_mean = 0.1 * jax.random.normal(k3, (in_features,), jnp.float32)
    r_var = 1.0 + 0.1 * jax.random.uniform(k4, (in_features,), jnp.float32)
    return gamma, beta, r_mean, r_var


def conditional_normalization(x, params, training=False):
    """x: (N, C, H, W) float32, NCHW just like the PyTorch module."""
    N, C, H, W = x.shape
    NC, HW = N * C, H * W

    if training and HW <= 1:
        # Match PyTorch InstanceNorm2d, which rejects single-element spatial dims in training.
        raise ValueError("Expected more than 1 spatial element when training")

    x2 = x.reshape(NC, HW)

    if training or (H > 1 and W > 1):
        hw_block = _lane_block(HW)
        # An 8-row tile must fit the (in + out, double-buffered, f32) VMEM budget.
        if 16 * _SUBLANE * hw_block <= _VMEM_BUFFER_BUDGET:
            out2 = _instance_norm_single(x2, hw_block)
        else:
            out2 = _instance_norm_streaming(x2)
    else:
        out2 = _batch_norm_eval(x2, params, N, C)

    return out2.reshape(N, C, H, W)


# --------------------------- Pure-JAX references ------------------------------

def _ref_instance_norm(x):
    mean = jnp.mean(x, axis=(2, 3), keepdims=True)
    var = jnp.mean((x - mean) ** 2, axis=(2, 3), keepdims=True)
    return (x - mean) / jnp.sqrt(var + EPS)


def _ref_batch_norm_eval(x, params):
    gamma, beta, r_mean, r_var = params
    g = gamma[None, :, None, None]
    b = beta[None, :, None, None]
    m = r_mean[None, :, None, None]
    v = r_var[None, :, None, None]
    return (x - m) / jnp.sqrt(v + EPS) * g + b


# ----------------------------------- Main -------------------------------------

if __name__ == "__main__":
    key = jax.random.PRNGKey(0)
    kx, kp, ky, kz, kw = jax.random.split(key, 5)

    N, C, H, W = 2, 4, 16, 16
    params = init_params(C, kp)

    # Path 1: eval mode, H > 1 and W > 1 -> InstanceNorm2d (HW lane-aligned, single-block).
    x = jax.random.normal(kx, (N, C, H, W), jnp.float32)
    out_in = jax.block_until_ready(conditional_normalization(x, params, training=False))
    ref_in = _ref_instance_norm(x)
    assert out_in.shape == x.shape
    assert jnp.allclose(out_in, ref_in, atol=1e-5, rtol=1e-5)

    # Path 2: eval mode, H == 1 -> BatchNorm2d (running stats + affine).
    x_small = jax.random.normal(ky, (N, C, 1, 8), jnp.float32)
    out_bn = jax.block_until_ready(conditional_normalization(x_small, params, training=False))
    ref_bn = _ref_batch_norm_eval(x_small, params)
    assert out_bn.shape == x_small.shape
    assert jnp.allclose(out_bn, ref_bn, atol=1e-5, rtol=1e-5)

    # Path 3: InstanceNorm with ragged shapes (NC=15 -> partial row block, HW=49 full-dim lanes).
    params_odd = init_params(5, kp)
    x_odd = jax.random.normal(kz, (3, 5, 7, 7), jnp.float32)
    out_odd = jax.block_until_ready(conditional_normalization(x_odd, params_odd, training=False))
    ref_odd = _ref_instance_norm(x_odd)
    assert out_odd.shape == x_odd.shape
    assert jnp.allclose(out_odd, ref_odd, atol=1e-5, rtol=1e-5)

    # Path 4: InstanceNorm with HW large enough to trigger the streaming (stats+apply) path.
    x_big = jax.random.normal(kw, (2, 4, 384, 384), jnp.float32)
    out_big = jax.block_until_ready(conditional_normalization(x_big, params, training=True))
    ref_big = _ref_instance_norm(x_big)
    assert out_big.shape == x_big.shape
    # Streaming path uses one-pass variance (E[x^2] - mean^2); allow slightly looser tolerance.
    assert jnp.allclose(out_big, ref_big, atol=1e-4, rtol=1e-4)

    print("KERNEL_OK")
</pallas_src>

<mosaic_0001>
module attributes {stable_mosaic.version = 11 : i64} {
  func.func @_instance_norm_kernel(%arg0: i32, %arg1: memref<8x256xf32, #tpu.memory_space<vmem>>, %arg2: memref<8x256xf32, #tpu.memory_space<vmem>>) attributes {dimension_semantics = [#tpu.dimension_semantics<parallel>], iteration_bounds = array<i64: 1>, scalar_prefetch = 0 : i64, scratch_operands = 0 : i64, tpu.core_type = #tpu.core_type<tc>, window_params = [{transform_indices = @transform_0, window_bounds = array<i64: 8, 256>}, {transform_indices = @transform_1, window_bounds = array<i64: 8, 256>}]} {
    %c0 = arith.constant 0 : index
    %c0_0 = arith.constant 0 : index
    %0 = vector.load %arg1[%c0, %c0_0] : memref<8x256xf32, #tpu.memory_space<vmem>>, vector<8x256xf32>
    %cst = arith.constant dense<0.000000e+00> : vector<8xf32>
    %1 = vector.multi_reduction <add>, %0, %cst [1] : vector<8x256xf32> to vector<8xf32>
    %2 = vector.shape_cast %1 : vector<8xf32> to vector<8x1xf32>
    %cst_1 = arith.constant 3.906250e-03 : f32
    %3 = vector.broadcast %cst_1 : f32 to vector<8x1xf32>
    %4 = arith.mulf %2, %3 : vector<8x1xf32>
    %5 = vector.broadcast %4 : vector<8x1xf32> to vector<8x256xf32>
    %6 = arith.subf %0, %5 : vector<8x256xf32>
    %7 = arith.mulf %6, %6 : vector<8x256xf32>
    %cst_2 = arith.constant dense<0.000000e+00> : vector<8xf32>
    %8 = vector.multi_reduction <add>, %7, %cst_2 [1] : vector<8x256xf32> to vector<8xf32>
    %9 = vector.shape_cast %8 : vector<8xf32> to vector<8x1xf32>
    %cst_3 = arith.constant 3.906250e-03 : f32
    %10 = vector.broadcast %cst_3 : f32 to vector<8x1xf32>
    %11 = arith.mulf %9, %10 : vector<8x1xf32>
    %cst_4 = arith.constant 9.99999974E-6 : f32
    %12 = vector.broadcast %cst_4 : f32 to vector<8x1xf32>
    %13 = arith.addf %11, %12 : vector<8x1xf32>
    %14 = math.rsqrt %13 : vector<8x1xf32>
    %15 = vector.broadcast %14 : vector<8x1xf32> to vector<8x256xf32>
    %16 = arith.mulf %6, %15 : vector<8x256xf32>
    %c0_5 = arith.constant 0 : index
    %c0_6 = arith.constant 0 : index
    %17 = vector.load %arg2[%c0_5, %c0_6] : memref<8x256xf32, #tpu.memory_space<vmem>>, vector<8x256xf32>
    tpu.vector_store %arg2[%c0_5, %c0_6], %16 {strides = array<i32>} : memref<8x256xf32, #tpu.memory_space<vmem>>, vector<8x256xf32>,
    return
  }
  func.func @transform_0(%arg0: i32) -> (i32, i32) {
    %c0_i32 = arith.constant 0 : i32
    %c0_i32_0 = arith.constant 0 : i32
    return %arg0, %c0_i32 : i32, i32
  }
  func.func @transform_1(%arg0: i32) -> (i32, i32) {
    %c0_i32 = arith.constant 0 : i32
    %c0_i32_0 = arith.constant 0 : i32
    return %arg0, %c0_i32 : i32, i32
  }
}

</mosaic_0001>

<bundles_post_ra>
// kernel: tpu_custom_call.1
= control target key start
LH: loop header
LB: loop body
LE: loop exit
PB: predicated region body
PF: predicated region fallthrough
CT: control target
= control target key end

     0   :  { %6 = vsyncpa [#allocation3], 0  ;;  %s144_s0 = inlined_call_operand.hbm [shape: f32[8,256], index: 0, kind: input, shape index: {}]   ;;  %s145_s1 = inlined_call_operand.hbm [shape: f32[8,256], index: 1, kind: output, shape index: {}]  }
   0x1   :  { %7 = vsyncpa [#allocation4], 0  ;;  %s108_s6 = smov [#allocation2]   ;;  %s60_s10 = scalar_lea.hbm %s144_s0, 256 }
   0x2   :  { %s14_s7 = sshll.u32 %s108_s6, 4  ;;  %p61_p0 = scmp.ne.s32.totalorder %s144_s0, %s60_s10  ;;  %s15_s7 = int_to_ptr.vmem [resolvable:$true] %s14_s7 }
   0x3   :  { %p64_p1 = scmp.lt.u32.totalorder %s60_s10, %s144_s0 }
   0x5   :  { %p66_p2 = pnand %p64_p1, %p61_p0 }
   0x7   :  { %69 = shalt.err (!%p66_p2)
}
   0x8   :  { %s70_s15 = scalar_lea.vmem %s15_s7, 256  ;;  %p75_p4 = scmp.lt.s32.totalorder %s15_s7, %s15_s7 }
   0x9   :  { %p71_p3 = scmp.ne.s32.totalorder %s15_s7, %s70_s15  ;;  %p76_p5 = scmp.lt.s32.totalorder %s70_s15, %s70_s15 }
   0xb   :  { %p77_p6 = por %p76_p5, %p75_p4 }
   0xd   :  { %p78_p7 = pnand %p77_p6, %p71_p3 }
   0xf   :  { %81 = shalt.err (!%p78_p7)
}
  0x10   :  { %17 = dma.hbm_to_vmem [thread:$0]  %s144_s0, 256, %s15_s7, [#allocation3]  }
  0x11   :  { %104 = dma.done.wait [#allocation3], 256  }
  0x12   :  { %105 = vsyncadd [#allocation3], 4294967040  ;;  %v21_v0 = vld [vmem:[#allocation2] sm:$0xff]  ;;  %v22_v1 = vld [vmem:[#allocation2 + $0x8] sm:$0xff]  ;;  %s109_s18 = smov [#allocation5]  }
  0x13   :  { %v23_v2 = vadd.f32 %v22_v1, %v21_v0  ;;  %s47_s0 = sshll.u32 %s109_s18, 4  ;;  %s48_s0 = int_to_ptr.vmem [resolvable:$true] %s47_s0 }
  0x14   :  { %s82_s19 = scalar_lea.vmem %s48_s0, 256  ;;  %p87_p9 = scmp.lt.s32.totalorder %s48_s0, %s48_s0 }
  0x15   :  { %24 = vadd.xlane.f32.xlu0 %v23_v2  ;;  %p83_p8 = scmp.ne.s32.totalorder %s48_s0, %s82_s19  ;;  %p88_p10 = scmp.lt.s32.totalorder %s82_s19, %s82_s19 }
  0x17   :  { %p89_p11 = por %p88_p10, %p87_p9 }
  0x19   :  { %p90_p12 = pnand %p89_p11, %p83_p8 }
  0xa2   :  { %v25_v3 = vpop.xlane.xlu0 %24 }
  0xa3   :  { %v26_v4 = vmul.f32 0.00390625, %v25_v3 }
  0xa5   :  { %v27_v5 = vsub.f32 %v21_v0, %v26_v4  ;;  %v28_v6 = vsub.f32 %v22_v1, %v26_v4 }
  0xa7   :  { %v29_v7 = vmul.f32 %v27_v5, %v27_v5  ;;  %v30_v8 = vmul.f32 %v28_v6, %v28_v6 }
  0xa9   :  { %v31_v9 = vadd.f32 %v30_v8, %v29_v7 }
  0xab   :  { %32 = vadd.xlane.f32.xlu0 %v31_v9 }
 0x138   :  { %v33_v10 = vpop.xlane.xlu0 %32 }
 0x139   :  { %v34_v11 = vmul.f32 0.00390625, %v33_v10 }
 0x13b   :  { %v35_v12 = vadd.f32 1e-05, %v34_v11 }
 0x13d   :  { %58 = vrsqrt.f32 %v35_v12 }
 0x147   :  { %v59_v13 = vpop.eup %58 }
 0x148   :  { %v37_v14 = vmul.f32 %v59_v13, %v27_v5  ;;  %v38_v15 = vmul.f32 %v59_v13, %v28_v6 }
 0x14a   :  { %39 = vst [vmem:[#allocation5] sm:$0xff] %v37_v14  ;;  %40 = vst [vmem:[#allocation5 + $0x8] sm:$0xff] %v38_v15 }
 0x14b   :  { %93 = shalt.err (!%p90_p12)
}
 0x14c   :  { %s94_s22 = scalar_lea.hbm %s145_s1, 256 }
 0x14d   :  { %p95_p13 = scmp.ne.s32.totalorder %s145_s1, %s94_s22  ;;  %p98_p0 = scmp.lt.u32.totalorder %s94_s22, %s145_s1 }
 0x14f   :  { %p100_p1 = pnand %p98_p0, %p95_p13 }
 0x151   :  { %103 = shalt.err (!%p100_p1)
}
 0x152   :  { %50 = dma.vmem_to_hbm [thread:$0]  %s48_s0, 256, %s145_s1, [#allocation4]  }
 0x153   :  { %106 = dma.done.wait [#allocation4], 256  }
 0x154   :  { %107 = vsyncadd [#allocation4], 4294967040 }
 0x155   :  { %54 = vsyncpa [#allocation3], 1 }
 0x156   :  { %55 = vsyncpa [#allocation4], 1 }

</bundles_post_ra>
